<compile_context>
chip_gen: v5e
topology: v5e:2x2
jax: 0.10.0
libtpu: 0.0.40
codegen_flags: <defaults>
</compile_context>

<pallas_src>
import functools

import jax
import jax.numpy as jnp
from jax.experimental import pallas as pl
from jax.experimental.pallas import tpu as pltpu


# ---------------------------------------------------------------------------
# Kernel
# ---------------------------------------------------------------------------
def _scaler_kernel(scale_ref, x_ref, o_ref, *, block_rows, resident_scale):
    # scale_ref: (N_pad, 1) f32 resident  OR  (block_rows, 1) f32 per-tile.
    # x_ref / o_ref: (block_rows, D) tiles of X / out.
    if resident_scale:
        start = pl.multiple_of(pl.program_id(0) * block_rows, block_rows)
        scale = scale_ref[pl.ds(start, block_rows), :]
    else:
        scale = scale_ref[...]
    # Multiply in X's dtype (bf16 stays bf16 on v6e/v7x); exp was done in f32.
    o_ref[...] = (x_ref[...] * scale.astype(x_ref.dtype)).astype(o_ref.dtype)


# ---------------------------------------------------------------------------
# Tiling helpers (all static / shape-derived)
# ---------------------------------------------------------------------------
def _round_up(x, m):
    return ((x + m - 1) // m) * m


def _vmem_capacity_bytes():
    try:
        return int(pltpu.get_tpu_info().vmem_capacity_bytes)
    except Exception:
        return 64 * 1024 * 1024  # conservative fallback (v7x per-TC)


def _sublane_rows(dtype):
    # f32 -> 8 rows, bf16 -> 16, int8/fp8 -> 32 (sublane packing granularity).
    return max(8, 32 // max(jnp.dtype(dtype).itemsize, 1))


_RESIDENT_SCALE_MAX_ROWS = 8192  # resident (N,1) f32 scale: <= 2 x 4 MiB VMEM


def _plan(N, D, x_dtype):
    itemsize = jnp.dtype(x_dtype).itemsize
    sub = _sublane_rows(x_dtype)
    capacity = _vmem_capacity_bytes()
    # Budget for the double-buffered (X in + out) pipelined tiles:
    #   v5e/v6e (128 MiB VMEM) -> 32 MiB, v7x (64 MiB/TC) -> 16 MiB.
    tile_budget = min(capacity // 4, 48 * 1024 * 1024)

    bytes_per_row = 2 * 2 * D * itemsize          # 2 buffers x (X tile + out tile)
    br = tile_budget // max(bytes_per_row, 1)
    br = min(br, _round_up(N, sub))               # never tile past N
    br = min(br, _round_up(pl.cdiv(N, 2), sub))   # >=2 grid steps (v7x: 2 TCs)
    br = max(sub, (br // sub) * sub)              # sublane-aligned for dtype
    br = int(br)

    grid = int(pl.cdiv(N, br))
    n_pad = grid * br
    resident = n_pad <= _RESIDENT_SCALE_MAX_ROWS

    # Scoped-VMEM request: pipelined tiles + scale buffers + slack, clamped.
    tile_bytes = 2 * 2 * br * D * itemsize
    scale_rows = n_pad if resident else br
    scale_bytes = 2 * scale_rows * 128 * 4        # (rows,1) f32 lane-padded, 2 bufs
    vmem_limit = tile_bytes + scale_bytes + (4 << 20)
    vmem_limit = max(16 << 20, min(vmem_limit, capacity * 3 // 4))
    return br, grid, n_pad, resident, int(vmem_limit)


# ---------------------------------------------------------------------------
# Forward
# ---------------------------------------------------------------------------
def _scaler_forward(omega, X):
    N, D = X.shape
    assert omega.shape[0] == N, "omega must have one entry per row of X"
    block_rows, grid, n_pad, resident, vmem_limit = _plan(N, D, X.dtype)

    # exp hoisted out of the kernel: O(N), f32, fused into the jitted program.
    scale = jnp.exp(omega.reshape(N).astype(jnp.float32)).reshape(N, 1)
    if resident:
        if n_pad != N:
            scale = jnp.pad(scale, ((0, n_pad - N), (0, 0)))  # padded rows never stored
        # Constant index_map -> DMA'd once, stays in VMEM across all grid steps.
        scale_spec = pl.BlockSpec((n_pad, 1), lambda i: (0, 0))
    else:
        # Fallback for very large N: per-tile scale column.
        scale_spec = pl.BlockSpec((block_rows, 1), lambda i: (i, 0))

    kernel = functools.partial(
        _scaler_kernel, block_rows=block_rows, resident_scale=resident)

    return pl.pallas_call(
        kernel,
        out_shape=jax.ShapeDtypeStruct((N, D), X.dtype),
        grid=(grid,),
        in_specs=[
            scale_spec,
            pl.BlockSpec((block_rows, D), lambda i: (i, 0)),   # X row tile
        ],
        out_specs=pl.BlockSpec((block_rows, D), lambda i: (i, 0)),
        compiler_params=pltpu.CompilerParams(
            dimension_semantics=("parallel",),
            vmem_limit_bytes=vmem_limit,
        ),
    )(scale, X)


scaler_forward = jax.jit(_scaler_forward)


# ---------------------------------------------------------------------------
# Module wrapper
# ---------------------------------------------------------------------------
class Scaler:
    """JAX/Pallas port of the PyTorch Scaler module (forward pass on TPU)."""

    def __init__(self, N, lambd=0.0):
        self.N = N
        self.lambd = lambd
        # Parameter(torch.zeros(N)) -> deterministic zeros
        self.omega_data = jnp.zeros((N,), dtype=jnp.float32)

    def __call__(self, X):
        return scaler_forward(self.omega_data, X)

    def prox(self, t):
        # Closed form of the original 2x2 block solve (tiny host-side update,
        # not a kernel target).
        A_11 = 1.0 + self.lambd * t
        b_1 = self.omega_data
        x_2 = jnp.sum(b_1) / self.N
        self.omega_data = (b_1 - x_2) / A_11


if __name__ == "__main__":
    key = jax.random.PRNGKey(0)
    k1, k2 = jax.random.split(key)

    N, D = 16, 128  # small shapes; D a multiple of 128 (lane-dense stores)
    X = jax.random.normal(k1, (N, D), dtype=jnp.float32)

    model = Scaler(N, lambd=0.1)

    # Default parameter (zeros) -> identity scaling.
    out0 = jax.block_until_ready(model(X))
    assert out0.shape == (N, D)
    assert jnp.allclose(out0, X, atol=1e-6, rtol=1e-6)

    # Non-trivial omega to exercise the kernel.
    model.omega_data = 0.5 * jax.random.normal(k2, (N,), dtype=jnp.float32)
    out = jax.block_until_ready(model(X))
    ref = jnp.exp(model.omega_data)[:, None] * X
    assert jnp.allclose(out, ref, atol=1e-5, rtol=1e-5)

    # prox sanity check: (omega - mean(omega)) / (1 + lambd*t)
    before = model.omega_data
    model.prox(t=0.5)
    ref_prox = (before - jnp.mean(before)) / (1.0 + model.lambd * 0.5)
    assert jnp.allclose(model.omega_data, ref_prox, atol=1e-6, rtol=1e-6)

    print("KERNEL_OK")
</pallas_src>

<mosaic_0001>
module attributes {stable_mosaic.version = 11 : i64} {
  func.func @_scaler_kernel(%arg0: i32, %arg1: memref<16x1xf32, #tpu.memory_space<vmem>>, %arg2: memref<8x128xf32, #tpu.memory_space<vmem>>, %arg3: memref<8x128xf32, #tpu.memory_space<vmem>>) attributes {dimension_semantics = [#tpu.dimension_semantics<parallel>], iteration_bounds = array<i64: 2>, scalar_prefetch = 0 : i64, scratch_operands = 0 : i64, tpu.core_type = #tpu.core_type<tc>, window_params = [{pipeline_mode = #tpu.pipeline_mode<synchronous>, transform_indices = @transform_0, window_bounds = array<i64: 16, 1>}, {transform_indices = @transform_1, window_bounds = array<i64: 8, 128>}, {transform_indices = @transform_2, window_bounds = array<i64: 8, 128>}]} {
    %c8_i32 = arith.constant 8 : i32
    %0 = arith.muli %arg0, %c8_i32 : i32
    %1 = tpu.assume_multiple %0, 8 : i32
    %2 = arith.index_cast %1 : i32 to index
    %c0 = arith.constant 0 : index
    %3 = vector.load %arg1[%2, %c0] : memref<16x1xf32, #tpu.memory_space<vmem>>, vector<8x1xf32>
    %c0_0 = arith.constant 0 : index
    %c0_1 = arith.constant 0 : index
    %4 = vector.load %arg2[%c0_0, %c0_1] : memref<8x128xf32, #tpu.memory_space<vmem>>, vector<8x128xf32>
    %5 = vector.broadcast %3 : vector<8x1xf32> to vector<8x128xf32>
    %6 = arith.mulf %4, %5 : vector<8x128xf32>
    %c0_2 = arith.constant 0 : index
    %c0_3 = arith.constant 0 : index
    %7 = vector.load %arg3[%c0_2, %c0_3] : memref<8x128xf32, #tpu.memory_space<vmem>>, vector<8x128xf32>
    tpu.vector_store %arg3[%c0_2, %c0_3], %6 {strides = array<i32>} : memref<8x128xf32, #tpu.memory_space<vmem>>, vector<8x128xf32>,
    return
  }
  func.func @transform_0(%arg0: i32) -> (i32, i32) {
    %c0_i32 = arith.constant 0 : i32
    %c0_i32_0 = arith.constant 0 : i32
    %c0_i32_1 = arith.constant 0 : i32
    return %c0_i32, %c0_i32_0 : i32, i32
  }
  func.func @transform_1(%arg0: i32) -> (i32, i32) {
    %c0_i32 = arith.constant 0 : i32
    %c0_i32_0 = arith.constant 0 : i32
    return %arg0, %c0_i32 : i32, i32
  }
  func.func @transform_2(%arg0: i32) -> (i32, i32) {
    %c0_i32 = arith.constant 0 : i32
    %c0_i32_0 = arith.constant 0 : i32
    return %arg0, %c0_i32 : i32, i32
  }
}

</mosaic_0001>

<bundles_post_ra>
// kernel: _scaler_forward.1
= control target key start
LH: loop header
LB: loop body
LE: loop exit
PB: predicated region body
PF: predicated region fallthrough
CT: control target
= control target key end

     0   :  { %7 = vsyncpa [#allocation3], 0  ;;  %s447_s0 = inlined_call_operand.vmem [shape: f32[16,1], index: 0, kind: input, shape index: {}]   ;;  %s448_s1 = inlined_call_operand.vmem [shape: f32[16,128], index: 1, kind: input, shape index: {}]   ;;  %s449_s2 = inlined_call_operand.hbm [shape: f32[16,128], index: 2, kind: output, shape index: {}]  }
   0x1   :  { %9 = vsyncpa [#allocation3 + $0x1], 0  ;;  %s359_s9 = smov 0   ;;  %s361_s10 = smov 0  }
   0x2   :  { %s363_s11 = smov 0   ;;  %s365_s12 = smov 0  }
   0x3 LB: > { %s380_s13 = sadd.s32 4294967295, %s341_s12   ;;  %s227_s14 = sadd.s32 4294967294, %s341_s12   ;;  %s341_s12 = sphi %s365_s12, %s455_s12   ;;  %s337_s11 = sphi %s363_s11, %s454_s11   ;;  %s333_s10 = sphi %s361_s10, %s453_s10   ;;  %s329_s9 = sphi %s359_s9, %s452_s9  }
   0x4   : > { %s384_s15 = sadd.s32 1, %s341_s12   ;;  %s69_s16 = sadd.s32 1, %s337_s11 }
   0x5   : > { %s66_s17 = ssub.s32 %s341_s12, %s384_s15  ;;  %p79_p0 = scmp.ne.s32.totalorder %s337_s11, %s333_s10 }
   0x6   : > { %p67_p1 = scmp.eq.s32.totalorder %s66_s17, 0  ;;  %p80_p2 = scmp.eq.s32.totalorder %s380_s13, 1 }
   0x7   : > { %p85_p3 = scmp.ne.s32.totalorder %s333_s10, %s329_s9  ;;  %p86_p4 = scmp.eq.s32.totalorder %s227_s14, 1 }
   0x8   : > { %s395_s18 = scalar_select %p67_p1, %s337_s11, %s69_s16  }
   0x9   : > { %p397_p5 = por %p80_p2, %p79_p0  ;;  %p401_p6 = por %p86_p4, %p85_p3 }
   0xa   : > { %p230_p7 = scmp.ge.s32.totalorder %s341_s12, 1  ;;  %p114_p8 = scmp.lt.s32.totalorder %s341_s12, 3 }
   0xc   : > { %p115_p9 = pnand %p230_p7, %p114_p8 }
   0xd   : > { %s233_s21 = sshll.u32 (!%p115_p9), %s380_s13, 3  ;;  %p135_p10 = scmp.lt.s32.totalorder (!%p115_p9), %s380_s13, 1 }
   0xe   : > { %118 = sbr.rel (%p115_p9) target bundleno = 141 (0x8d), region = 28  ;;  %s140_s24 = scalar_lea.vmem (!%p115_p9), %s447_s0, %s233_s21 }
   0xf   : > { %s132_s25 = sand.u32 (!%p115_p9), 1, %s333_s10   ;;  %s161_s30 = scalar_lea.hbm (!%p115_p9), %s449_s2, %s233_s21 }
  0x10   : > { %s231_s26 = sshll.u32 (!%p115_p9), %s132_s25, 3  ;;  %s165_s6 = sshll.u32 (!%p115_p9), %s161_s30, 4  ;;  %s166_s6 = int_to_ptr.hbm [resolvable:$true] %s165_s6 }
  0x11   : > { %s134_s7 = scalar_lea.vmem (!%p115_p9), [#allocation2], %s231_s26  ;;  %s151_s14 = scalar_lea.sflag (!%p115_p9), [#allocation3], %s132_s25 }
  0x12   : > { %s163_s8 = sshll.u32 (!%p115_p9), %s134_s7, 4  ;;  %s299_s22 = scalar_lea.hbm (!%p115_p9), %s449_s2, 16  ;;  %s164_s8 = int_to_ptr.vmem [resolvable:$true] %s163_s8 }
  0x13   : > { %v343_v0 = vmov 0   ;;  %v141_v1 = vld [vmem:[%s140_s24] sm:$0xff]  ;;  %s457_s13 = smov (!%p135_p10, %s380_s13), 1 }
  0x14   : > { %278 = vset.pattern.permute.xlu0 %v343_v0  ;;  %s232_s27 = sshll.u32 %s457_s13, 3  ;;  %s293_s13 = sshra.s32 %s166_s6, 4  ;;  %s294_s13 = int_to_ptr.hbm [resolvable:$true] %s293_s13 }
  0x15   : > { %145 = vperm.xlu0 %278, %v141_v1   ;;  %s138_s5 = scalar_lea.vmem %s448_s1, %s232_s27  ;;  %s295_s16 = scalar_lea.hbm %s294_s13, 8 }
  0x16   : > { %v142_v2 = vld [vmem:[%s138_s5] sm:$0xff]  ;;  %p296_p11 = scmp.ne.s32.totalorder %s294_s13, %s295_s16  ;;  %p300_p0 = scmp.lt.s32.totalorder %s294_s13, %s449_s2 }
  0x17   : > { %p301_p1 = scmp.lt.s32.totalorder %s299_s22, %s295_s16 }
  0x18   : > { %p297_p12 = pnand %p296_p11, %p397_p5 }
  0x19   : > { %p302_p2 = por %p301_p1, %p300_p0 }
  0x1a   : > { %p298_p13 = pneg %p297_p12 }
  0x1c   : > { %p303_p3 = pnand %p302_p2, %p298_p13 }
  0x87   : > { %v146_v3 = vpop.permute.xlu0 %145 }
  0x88   : > { %v148_v4 = vmul.f32 %v146_v3, %v142_v2 }
  0x8a   : > { %149 = vst [vmem:[%s134_s7] sm:$0xff] %v148_v4 }
  0x8b   : > { %306 = shalt.err (!%p303_p3)
}
  0x8c   : > { %238 = dma.vmem_to_hbm [thread:$0]  (%p397_p5), %s164_s8, 128, %s166_s6, %s151_s14  }
  0x8d PF: > { %p244_p4 = scmp.ge.s32.totalorder %s341_s12, 2  ;;  %s177_s25 = sand.u32 1, %s329_s9  }
  0x8e   : > { %s178_s26 = scalar_lea.sflag [#allocation3], %s177_s25 }
  0x8f   : > { %p241_p7 = pnand %p244_p4, %p401_p6 }
  0x91   : > { %p242_p8 = pneg %p241_p7 }
  0x93   : > { %324 = dma.done.wait (%p242_p8), %s178_s26, 128  }
  0x94   : > { %326 = vsyncadd (%p242_p8), %s178_s26, 4294967168  ;;  %p12_p9 = scmp.ge.s32.totalorder %s384_s15, 4   ;;  %s452_s9 = smov %s333_s10 }
  0x95   : > { %s453_s10 = smov %s337_s11  ;;  %s454_s11 = smov %s395_s18 }
  0x96   : > { %s455_s12 = smov %s384_s15  ;;  %14 = sbr.rel (!%p12_p9) target bundleno = 3 (0x3), region = 64 }
  0x9b   :  { %184 = vsyncpa [#allocation3], 1 }
  0x9c   :  { %186 = vsyncpa [#allocation3 + $0x1], 1 }

</bundles_post_ra>
